<compile_context>
chip_gen: v7x
topology: tpu7x:2x2x1
jax: 0.10.0
libtpu: 0.0.40
codegen_flags: <defaults>
</compile_context>

<pallas_src>
import functools

import jax
import jax.numpy as jnp
from jax.experimental import pallas as pl
from jax.experimental.pallas import tpu as pltpu

_LANE = 128      # lane width (batch axis granularity in the transposed layout)
_SUBLANE = 8     # f32 sublane granularity (bias packing alignment)


def _round_up(x, m):
    return ((x + m - 1) // m) * m


def _layernorm_fm(x, eps=1e-5):
    # Feature-major LayerNorm: features on axis 0 (sublanes), batch on lanes.
    # Single-pass: one (sum, sum-of-squares) reduction pair per LN instead of
    # two dependent passes; variance clamped at 0, eps guards rsqrt.  f32 math.
    n = x.shape[0]
    inv_n = 1.0 / float(n)
    mean = jnp.sum(x, axis=0, keepdims=True) * inv_n
    mean_sq = jnp.sum(x * x, axis=0, keepdims=True) * inv_n
    var = jnp.maximum(mean_sq - mean * mean, 0.0)
    return (x - mean) * jax.lax.rsqrt(var + eps)


def _actor_kernel(x_ref, w1_ref, w2_ref, w3_ref, b_ref, out_ref, *,
                  max_action, normalise, h1, h2, action_dim,
                  b1_off, b2_off, b3_off):
    x = x_ref[...]                                            # (state_dim, TB)

    # Layer 1: W1^T @ x_T (MXU, f32 accumulation); bias broadcasts along lanes.
    h = jnp.dot(w1_ref[...], x, preferred_element_type=jnp.float32)
    h = h + b_ref[b1_off:b1_off + h1, :]
    if normalise:
        h = _layernorm_fm(h)
    h = jnp.maximum(h, 0.0)

    # Layer 2
    h = jnp.dot(w2_ref[...], h.astype(w2_ref.dtype),
                preferred_element_type=jnp.float32)
    h = h + b_ref[b2_off:b2_off + h2, :]
    if normalise:
        h = _layernorm_fm(h)
    h = jnp.maximum(h, 0.0)

    # Layer 3 (output head)
    z = jnp.dot(w3_ref[...], h.astype(w3_ref.dtype),
                preferred_element_type=jnp.float32)
    z = z + b_ref[b3_off:b3_off + action_dim, :]
    if normalise:
        z = _layernorm_fm(z)

    # Lane-dense store: (action_dim, TB) with TB a multiple of 128.
    out_ref[...] = (max_action * jnp.tanh(z)).astype(out_ref.dtype)


def actor_forward(state, params, *, max_action, normalise,
                  block_batch=2048, compute_dtype=jnp.float32,
                  split_across_cores=True):
    """Fused 3-layer MLP forward as a single batch-lane-tiled Pallas TPU kernel."""
    w1, b1, w2, b2, w3, b3 = params
    batch, state_dim = state.shape
    h1 = w1.shape[1]
    h2 = w2.shape[1]
    action_dim = w3.shape[1]

    # --- batch tiling: batch is the lane axis -> tile is a multiple of 128. ---
    padded128 = _round_up(batch, _LANE)
    tb = max(_LANE, min(_round_up(block_batch, _LANE), padded128))
    if split_across_cores and padded128 // tb < 2 and padded128 >= 2 * _LANE:
        # Guarantee >= 2 grid steps so the "parallel" axis can shard across
        # v7x's two TensorCores; the extra grid step is ~0.35 us on v5e/v6e.
        tb = max(_LANE, (padded128 // 2) // _LANE * _LANE)
    padded_batch = _round_up(batch, tb)
    grid = (padded_batch // tb,)

    # --- feature-major re-layout (batch on lanes, features on sublanes). ---
    state_t = state.T                                   # (state_dim, batch)
    if padded_batch != batch:
        state_t = jnp.pad(state_t, ((0, 0), (0, padded_batch - batch)))
    w1t, w2t, w3t = w1.T, w2.T, w3.T                    # (out_feat, in_feat)

    # Optional bf16 matmul operands (f32 accumulation in-kernel).  Default is
    # f32 — on v5e the bf16 activation casts cost VPU pack ops for ~no gain.
    if compute_dtype != jnp.float32:
        state_t = state_t.astype(compute_dtype)
        w1t = w1t.astype(compute_dtype)
        w2t = w2t.astype(compute_dtype)
        w3t = w3t.astype(compute_dtype)

    # --- pack the three biases (f32) into a single 8-aligned (total, 1) column. ---
    b1_off = 0
    b2_off = b1_off + _round_up(h1, _SUBLANE)
    b3_off = b2_off + _round_up(h2, _SUBLANE)
    total_b = b3_off + _round_up(action_dim, _SUBLANE)
    b_all = jnp.zeros((total_b, 1), jnp.float32)
    b_all = b_all.at[b1_off:b1_off + h1, 0].set(b1.reshape(-1).astype(jnp.float32))
    b_all = b_all.at[b2_off:b2_off + h2, 0].set(b2.reshape(-1).astype(jnp.float32))
    b_all = b_all.at[b3_off:b3_off + action_dim, 0].set(
        b3.reshape(-1).astype(jnp.float32))

    kernel = functools.partial(
        _actor_kernel, max_action=float(max_action), normalise=bool(normalise),
        h1=h1, h2=h2, action_dim=action_dim,
        b1_off=b1_off, b2_off=b2_off, b3_off=b3_off)

    # Batch-lane-tiled activations, VMEM-resident weights/biases.
    in_specs = [
        pl.BlockSpec((state_dim, tb), lambda i: (0, i)),      # state^T
        pl.BlockSpec((h1, state_dim), lambda i: (0, 0)),      # W1^T
        pl.BlockSpec((h2, h1), lambda i: (0, 0)),             # W2^T
        pl.BlockSpec((action_dim, h2), lambda i: (0, 0)),     # W3^T
        pl.BlockSpec((total_b, 1), lambda i: (0, 0)),         # packed biases
    ]
    out_specs = pl.BlockSpec((action_dim, tb), lambda i: (0, i))

    # Advisory cost estimate for XLA's scheduler.
    flops = 2 * padded_batch * (state_dim * h1 + h1 * h2 + h2 * action_dim)
    transcendentals = padded_batch * action_dim + (3 * padded_batch if normalise else 0)
    act_bytes = jnp.dtype(compute_dtype).itemsize
    bytes_accessed = (
        padded_batch * state_dim * act_bytes                          # state in
        + padded_batch * action_dim * 4                               # output
        + (state_dim * h1 + h1 * h2 + h2 * action_dim) * act_bytes    # weights
        + total_b * 4)                                                # biases

    out_t = pl.pallas_call(
        kernel,
        out_shape=jax.ShapeDtypeStruct((action_dim, padded_batch), jnp.float32),
        grid=grid,
        in_specs=in_specs,
        out_specs=out_specs,
        compiler_params=pltpu.CompilerParams(
            dimension_semantics=("parallel",)),
        cost_estimate=pl.CostEstimate(
            flops=flops,
            transcendentals=transcendentals,
            bytes_accessed=bytes_accessed),
    )(state_t, w1t, w2t, w3t, b_all)

    # (action_dim, padded_batch) -> (batch, action_dim); slicing drops padding.
    return out_t[:, :batch].T


# ----------------------------- init & reference -----------------------------

def _xavier_uniform(key, fan_in, fan_out):
    # nn.init.xavier_uniform_: bound depends only on fan_in + fan_out, so the
    # [in, out] storage layout does not change the distribution.
    bound = jnp.sqrt(6.0 / (fan_in + fan_out))
    return jax.random.uniform(key, (fan_in, fan_out), jnp.float32, -bound, bound)


def _linear_bias(key, fan_in, fan_out):
    # nn.Linear default bias init: U(-1/sqrt(fan_in), 1/sqrt(fan_in)).
    bound = 1.0 / jnp.sqrt(float(fan_in))
    return jax.random.uniform(key, (1, fan_out), jnp.float32, -bound, bound)


def init_actor_params(key, state_dim, action_dim, neurons_list):
    assert len(neurons_list) == 2, "this script builds the num_layers == 2 variant"
    h1, h2 = neurons_list
    k = jax.random.split(key, 6)
    w1 = _xavier_uniform(k[0], state_dim, h1)
    b1 = _linear_bias(k[1], state_dim, h1)
    w2 = _xavier_uniform(k[2], h1, h2)
    b2 = _linear_bias(k[3], h1, h2)
    w3 = _xavier_uniform(k[4], h2, action_dim)
    b3 = _linear_bias(k[5], h2, action_dim)
    return (w1, b1, w2, b2, w3, b3)


def _layernorm_ref(x, eps=1e-5):
    # Two-pass LayerNorm over the last axis (matches nn.LayerNorm, no affine).
    mean = jnp.mean(x, axis=-1, keepdims=True)
    centered = x - mean
    var = jnp.mean(centered * centered, axis=-1, keepdims=True)
    return centered * jax.lax.rsqrt(var + eps)


def actor_forward_ref(state, params, *, max_action, normalise):
    # Pure-JAX reference of the same forward, for correctness checks.
    w1, b1, w2, b2, w3, b3 = params
    h = state @ w1 + b1
    if normalise:
        h = _layernorm_ref(h)
    h = jnp.maximum(h, 0.0)
    h = h @ w2 + b2
    if normalise:
        h = _layernorm_ref(h)
    h = jnp.maximum(h, 0.0)
    z = h @ w3 + b3
    if normalise:
        z = _layernorm_ref(z)
    return max_action * jnp.tanh(z)


if __name__ == "__main__":
    key = jax.random.PRNGKey(0)
    k_state, k_params, k_state2 = jax.random.split(key, 3)

    # Small shapes consistent with the module's forward.
    batch, state_dim, action_dim = 8, 32, 8
    neurons_list = [64, 32]
    max_action = 2.0

    state = jax.random.normal(k_state, (batch, state_dim), jnp.float32)
    params = init_actor_params(k_params, state_dim, action_dim, neurons_list)

    ok = True
    for normalise in (False, True):
        ref = actor_forward_ref(state, params, max_action=max_action,
                                normalise=normalise)

        # f32 matmul path (one-pass LN in-kernel -> slightly looser than 1e-5).
        out = jax.block_until_ready(
            actor_forward(state, params, max_action=max_action,
                          normalise=normalise))
        ok = ok and out.shape == (batch, action_dim)
        ok = ok and bool(jnp.allclose(out, ref, atol=1e-4, rtol=1e-4))

        # bf16 matmul-operand path (f32 accumulation, looser tolerance).
        out_bf16 = jax.block_until_ready(
            actor_forward(state, params, max_action=max_action,
                          normalise=normalise, compute_dtype=jnp.bfloat16))
        ok = ok and bool(jnp.allclose(out_bf16, ref, atol=3e-2, rtol=3e-2))

    # Multi-grid-step + batch-padding path: batch not a multiple of the tile.
    batch2 = 300
    state2 = jax.random.normal(k_state2, (batch2, state_dim), jnp.float32)
    ref2 = actor_forward_ref(state2, params, max_action=max_action,
                             normalise=True)
    out2 = jax.block_until_ready(
        actor_forward(state2, params, max_action=max_action,
                      normalise=True, block_batch=128))
    ok = ok and out2.shape == (batch2, action_dim)
    ok = ok and bool(jnp.allclose(out2, ref2, atol=1e-4, rtol=1e-4))

    if ok:
        print("KERNEL_OK")
</pallas_src>

<mosaic_0001>
module attributes {stable_mosaic.version = 11 : i64} {
  func.func @_actor_kernel(%arg0: i32, %arg1: memref<32x128xf32, #tpu.memory_space<vmem>>, %arg2: memref<64x32xf32, #tpu.memory_space<vmem>>, %arg3: memref<32x64xf32, #tpu.memory_space<vmem>>, %arg4: memref<8x32xf32, #tpu.memory_space<vmem>>, %arg5: memref<104x1xf32, #tpu.memory_space<vmem>>, %arg6: memref<8x128xf32, #tpu.memory_space<vmem>>) attributes {dimension_semantics = [#tpu.dimension_semantics<parallel>], iteration_bounds = array<i64: 1>, scalar_prefetch = 0 : i64, scratch_operands = 0 : i64, tpu.core_type = #tpu.core_type<tc>, window_params = [{transform_indices = @transform_0, window_bounds = array<i64: 32, 128>}, {pipeline_mode = #tpu.pipeline_mode<synchronous>, transform_indices = @transform_1, window_bounds = array<i64: 64, 32>}, {pipeline_mode = #tpu.pipeline_mode<synchronous>, transform_indices = @transform_2, window_bounds = array<i64: 32, 64>}, {pipeline_mode = #tpu.pipeline_mode<synchronous>, transform_indices = @transform_3, window_bounds = array<i64: 8, 32>}, {pipeline_mode = #tpu.pipeline_mode<synchronous>, transform_indices = @transform_4, window_bounds = array<i64: 104, 1>}, {transform_indices = @transform_5, window_bounds = array<i64: 8, 128>}]} {
    %c0 = arith.constant 0 : index
    %c0_0 = arith.constant 0 : index
    %0 = vector.load %arg1[%c0, %c0_0] : memref<32x128xf32, #tpu.memory_space<vmem>>, vector<32x128xf32>
    %c0_1 = arith.constant 0 : index
    %c0_2 = arith.constant 0 : index
    %1 = vector.load %arg2[%c0_1, %c0_2] : memref<64x32xf32, #tpu.memory_space<vmem>>, vector<64x32xf32>
    %cst = arith.constant dense<0.000000e+00> : vector<64x128xf32>
    %2 = tpu.matmul %1, %0, %cst {dimension_numbers = #tpu.dot_dimension_numbers<[1], [0], [0], [1], [0, 0, 1, 1], [], []>} : vector<64x32xf32>, vector<32x128xf32>, vector<64x128xf32> -> vector<64x128xf32>
    %c0_3 = arith.constant 0 : index
    %c0_4 = arith.constant 0 : index
    %3 = vector.load %arg5[%c0_3, %c0_4] : memref<104x1xf32, #tpu.memory_space<vmem>>, vector<64x1xf32>
    %4 = vector.broadcast %3 : vector<64x1xf32> to vector<64x128xf32>
    %5 = arith.addf %2, %4 : vector<64x128xf32>
    %cst_5 = arith.constant 0.000000e+00 : f32
    %6 = vector.broadcast %cst_5 : f32 to vector<64x128xf32>
    %7 = arith.maximumf %5, %6 : vector<64x128xf32>
    %c0_6 = arith.constant 0 : index
    %c0_7 = arith.constant 0 : index
    %8 = vector.load %arg3[%c0_6, %c0_7] : memref<32x64xf32, #tpu.memory_space<vmem>>, vector<32x64xf32>
    %cst_8 = arith.constant dense<0.000000e+00> : vector<32x128xf32>
    %9 = tpu.matmul %8, %7, %cst_8 {dimension_numbers = #tpu.dot_dimension_numbers<[1], [0], [0], [1], [0, 0, 1, 1], [], []>} : vector<32x64xf32>, vector<64x128xf32>, vector<32x128xf32> -> vector<32x128xf32>
    %c64 = arith.constant 64 : index
    %c0_9 = arith.constant 0 : index
    %10 = vector.load %arg5[%c64, %c0_9] : memref<104x1xf32, #tpu.memory_space<vmem>>, vector<32x1xf32>
    %11 = vector.broadcast %10 : vector<32x1xf32> to vector<32x128xf32>
    %12 = arith.addf %9, %11 : vector<32x128xf32>
    %cst_10 = arith.constant 0.000000e+00 : f32
    %13 = vector.broadcast %cst_10 : f32 to vector<32x128xf32>
    %14 = arith.maximumf %12, %13 : vector<32x128xf32>
    %c0_11 = arith.constant 0 : index
    %c0_12 = arith.constant 0 : index
    %15 = vector.load %arg4[%c0_11, %c0_12] : memref<8x32xf32, #tpu.memory_space<vmem>>, vector<8x32xf32>
    %cst_13 = arith.constant dense<0.000000e+00> : vector<8x128xf32>
    %16 = tpu.matmul %15, %14, %cst_13 {dimension_numbers = #tpu.dot_dimension_numbers<[1], [0], [0], [1], [0, 0, 1, 1], [], []>} : vector<8x32xf32>, vector<32x128xf32>, vector<8x128xf32> -> vector<8x128xf32>
    %c96 = arith.constant 96 : index
    %c0_14 = arith.constant 0 : index
    %17 = vector.load %arg5[%c96, %c0_14] : memref<104x1xf32, #tpu.memory_space<vmem>>, vector<8x1xf32>
    %18 = vector.broadcast %17 : vector<8x1xf32> to vector<8x128xf32>
    %19 = arith.addf %16, %18 : vector<8x128xf32>
    %20 = math.tanh %19 : vector<8x128xf32>
    %cst_15 = arith.constant 2.000000e+00 : f32
    %21 = vector.broadcast %cst_15 : f32 to vector<8x128xf32>
    %22 = arith.mulf %21, %20 : vector<8x128xf32>
    %c0_16 = arith.constant 0 : index
    %c0_17 = arith.constant 0 : index
    %23 = vector.load %arg6[%c0_16, %c0_17] : memref<8x128xf32, #tpu.memory_space<vmem>>, vector<8x128xf32>
    tpu.vector_store %arg6[%c0_16, %c0_17], %22 {strides = array<i32>} : memref<8x128xf32, #tpu.memory_space<vmem>>, vector<8x128xf32>,
    return
  }
  func.func @transform_0(%arg0: i32) -> (i32, i32) {
    %c0_i32 = arith.constant 0 : i32
    %c0_i32_0 = arith.constant 0 : i32
    return %c0_i32, %arg0 : i32, i32
  }
  func.func @transform_1(%arg0: i32) -> (i32, i32) {
    %c0_i32 = arith.constant 0 : i32
    %c0_i32_0 = arith.constant 0 : i32
    %c0_i32_1 = arith.constant 0 : i32
    return %c0_i32, %c0_i32_0 : i32, i32
  }
  func.func @transform_2(%arg0: i32) -> (i32, i32) {
    %c0_i32 = arith.constant 0 : i32
    %c0_i32_0 = arith.constant 0 : i32
    %c0_i32_1 = arith.constant 0 : i32
    return %c0_i32, %c0_i32_0 : i32, i32
  }
  func.func @transform_3(%arg0: i32) -> (i32, i32) {
    %c0_i32 = arith.constant 0 : i32
    %c0_i32_0 = arith.constant 0 : i32
    %c0_i32_1 = arith.constant 0 : i32
    return %c0_i32, %c0_i32_0 : i32, i32
  }
  func.func @transform_4(%arg0: i32) -> (i32, i32) {
    %c0_i32 = arith.constant 0 : i32
    %c0_i32_0 = arith.constant 0 : i32
    %c0_i32_1 = arith.constant 0 : i32
    return %c0_i32, %c0_i32_0 : i32, i32
  }
  func.func @transform_5(%arg0: i32) -> (i32, i32) {
    %c0_i32 = arith.constant 0 : i32
    %c0_i32_0 = arith.constant 0 : i32
    return %c0_i32, %arg0 : i32, i32
  }
}

</mosaic_0001>

<bundles_post_ra>
// kernel: tpu_custom_call.1
= control target key start
LH: loop header
LB: loop body
LE: loop exit
PB: predicated region body
PF: predicated region fallthrough
CT: control target
= control target key end

     0   :  { %vm81_vm0 = vcmask 261120   ;;  %v604_v6 = vmov 0   ;;  %s754_s0 = inlined_call_operand.vmem [shape: f32[32,128], index: 0, kind: input, shape index: {}]   ;;  %s755_s1 = inlined_call_operand.vmem [shape: f32[64,32], index: 1, kind: input, shape index: {}]   ;;  %s756_s2 = inlined_call_operand.vmem [shape: f32[32,64], index: 2, kind: input, shape index: {}]   ;;  %s757_s3 = inlined_call_operand.vmem [shape: f32[8,32], index: 3, kind: input, shape index: {}]   ;;  %s758_s4 = inlined_call_operand.vmem [shape: f32[104,1], index: 4, kind: input, shape index: {}]   ;;  %s759_s5 = inlined_call_operand.hbm [shape: f32[8,128], index: 5, kind: output, shape index: {}]  }
   0x1   :  { %v21_v0 = vld [vmem:[%s754_s0] sm:$0xff]  ;;  %v22_v1 = vld [vmem:[%s754_s0 + $0x8] sm:$0xff]  ;;  %v23_v2 = vld [vmem:[%s754_s0 + $0x10] sm:$0xff]  ;;  %576 = vset.pattern.permute.xlu0 %v604_v6  ;;  %577 = vset.pattern.permute.xlu1 %v604_v6 }
   0x2   :  { %v541_v3 = vpack.c.bf16 %v22_v1, %v21_v0  ;;  %v24_v4 = vld [vmem:[%s754_s0 + $0x18] sm:$0xff]  ;;  %v25_v5 = vld [vmem:[%s755_s1] sm:$0xff]  ;;  %v35_v9 = vld [vmem:[%s758_s4 + $0x10] sm:$0xff] }
   0x3   :  { %v545_v7 = vpack.c.bf16 %v24_v4, %v23_v2  ;;  %496 = vmatprep.mubr.msk.f32.mxu0 %vm81_vm0, %v25_v5  ;;  %v33_v8 = vld [vmem:[%s758_s4] sm:$0xff]  ;;  %v34_v10 = vld [vmem:[%s758_s4 + $0x8] sm:$0xff]  ;;  %53 = vperm.xlu1 %577, %v35_v9   ;;  %v36_v11 = vld [vmem:[%s758_s4 + $0x18] sm:$0xff] }
   0x4   :  { %542 = vmatprep.subr.bf16.mxu0 %v541_v3  ;;  %43 = vperm.xlu0 %576, %v33_v8   ;;  %v26_v12 = vld [vmem:[%s755_s1 + $0x8] sm:$0xff] }
   0x5   :  { %544 = vmatpush3.bf16.msra.mxu0 %v541_v3 }
   0x6   :  { %546 = vmatprep.subr.bf16.mxu0 %v545_v7 }
   0x9   :  { %548 = vmatpush3.bf16.msra.mxu0 %v545_v7 }
   0xa   :  { %10 = vsyncpa [#allocation3], 0  ;;  %v27_v13 = vld [vmem:[%s755_s1 + $0x10] sm:$0xff]  ;;  %48 = vperm.xlu0 %576, %v34_v10   ;;  %v37_v14 = vld [vmem:[%s758_s4 + $0x20] sm:$0xff]  ;;  %58 = vperm.xlu1 %577, %v36_v11   ;;  %vm247_vm1 = vcmask 523264   ;;  %v605_v4 = vmov 0.0|0.0  }
   0xb   :  { %v38_v15 = vld [vmem:[%s758_s4 + $0x28] sm:$0xff]  ;;  %v28_v16 = vld [vmem:[%s755_s1 + $0x18] sm:$0xff]  ;;  %v29_v17 = vld [vmem:[%s755_s1 + $0x20] sm:$0xff]  ;;  %565 = vmatprep.subr.bf16.mxu0 %v605_v4  ;;  %vm606_vm2 = vmmov 0   ;;  %v607_v5 = vmov 0.0   ;;  %s608_s23 = smov [#allocation2]  }
   0xc   :  { %497 = vmatmul.mubr.msk.f32.vlgmr.msra.gmra.mrb[0].mxu0 %vm81_vm0, %v26_v12  ;;  %v39_v18 = vld [vmem:[%s758_s4 + $0x30] sm:$0xff]  ;;  %v40_v19 = vld [vmem:[%s758_s4 + $0x38] sm:$0xff]  ;;  %v30_v20 = vld [vmem:[%s755_s1 + $0x28] sm:$0xff]  ;;  %s438_s24 = sshll.u32 %s608_s23, 4  ;;  %s439_s24 = int_to_ptr.vmem [resolvable:$true] %s438_s24 }
   0xd   :  { %499 = vmatprep.mubr.msk.f32.mxu0 %vm81_vm0, %v27_v13  ;;  %v31_v21 = vld [vmem:[%s755_s1 + $0x30] sm:$0xff]  ;;  %v223_v22 = vld [vmem:[%s758_s4 + $0x40] sm:$0xff]  ;;  %v224_v23 = vld [vmem:[%s758_s4 + $0x48] sm:$0xff]  ;;  %s580_s25 = scalar_lea.vmem %s439_s24, 128  ;;  %p585_p1 = scmp.lt.s32.totalorder %s439_s24, %s439_s24 }
   0xe   :  { %63 = vperm.xlu0 %576, %v37_v14   ;;  %68 = vperm.xlu1 %577, %v38_v15   ;;  %v32_v24 = vld [vmem:[%s755_s1 + $0x38] sm:$0xff]  ;;  %v225_v25 = vld [vmem:[%s758_s4 + $0x50] sm:$0xff]  ;;  %v350_v27 = vld [vmem:[%s758_s4 + $0x60] sm:$0xff]  ;;  %p581_p0 = scmp.ne.s32.totalorder %s439_s24, %s580_s25  ;;  %p586_p2 = scmp.lt.s32.totalorder %s580_s25, %s580_s25 }
   0xf   :  { %v226_v26 = vld [vmem:[%s758_s4 + $0x58] sm:$0xff]  ;;  %v219_v28 = vld [vmem:[%s756_s2] sm:$0xff]  ;;  %v220_v1 = vld [vmem:[%s756_s2 + $0x8] sm:$0xff] }
  0x10   :  { %500 = vmatmul.mubr.msk.f32.gmra.mrb[2].mxu0 %vm81_vm0, %v28_v16  ;;  %524 = vmatprep.mubr.msk.f32.mxu1 %vm247_vm1, %v219_v28  ;;  %v221_v2 = vld [vmem:[%s756_s2 + $0x10] sm:$0xff]  ;;  %v222_v3 = vld [vmem:[%s756_s2 + $0x18] sm:$0xff]  ;;  %p587_p3 = por %p586_p2, %p585_p1 }
  0x11   :  { %502 = vmatprep.mubr.msk.f32.mxu0 %vm81_vm0, %v29_v17 }
  0x12   :  { %73 = vperm.xlu0 %576, %v39_v18   ;;  %78 = vperm.xlu1 %577, %v40_v19   ;;  %p588_p4 = pnand %p587_p3, %p581_p0 }
  0x14   :  { %503 = vmatmul.mubr.msk.f32.gmra.mrb[4].mxu0 %vm81_vm0, %v30_v20 }
  0x15   :  { %505 = vmatprep.mubr.msk.f32.mxu0 %vm81_vm0, %v31_v21 }
  0x16   :  { %229 = vperm.xlu0 %576, %v223_v22   ;;  %234 = vperm.xlu1 %577, %v224_v23  }
  0x18   :  { %506 = vmatmul.mubr.msk.f32.gmra.mrb[6].mxu0 %vm81_vm0, %v32_v24  ;;  %v349_v24 = vld [vmem:[%s757_s3] sm:$0xff] }
  0x19   :  { %538 = vmatprep.mubr.msk.f32.mxu0 %vm606_vm2, %v607_v5 }
  0x1a   :  { %239 = vperm.xlu0 %576, %v225_v25   ;;  %244 = vperm.xlu1 %577, %v226_v26  }
  0x1e   :  { %353 = vperm.xlu0 %576, %v350_v27  }
  0x82   :  { %v54_v30 = vpop.permute.xlu1 %53 }
  0x83   :  { %v44_v29 = vpop.permute.xlu0 %43 }
  0x89   :  { %v49_v31 = vpop.permute.xlu0 %48  ;;  %v59_v32 = vpop.permute.xlu1 %58 }
  0x8d   :  { %v69_v42 = vpop.permute.xlu1 %68  ;;  %v64_v45 = vpop.permute.xlu0 %63 }
  0x91   :  { %v79_v54 = vpop.permute.xlu1 %78  ;;  %v74_v57 = vpop.permute.xlu0 %73 }
  0x95   :  { %v235_v6 = vpop.permute.xlu1 %234  ;;  %v230_v7 = vpop.permute.xlu0 %229 }
  0x99   :  { %v245_v13 = vpop.permute.xlu1 %244  ;;  %v240_v16 = vpop.permute.xlu0 %239 }
  0x9d   :  { %v354_v25 = vpop.permute.xlu0 %353 }
  0xdf   :  { %v498_v33 = vpop.f32.mrb[0].mxu0 }
  0xe0   :  { %v178_v34 = vadd.f32 %v498_v33, %v49_v31  ;;  %v172_v35 = vpop.f32.mrb[1].mxu0 }
  0xe1   :  { %v173_v36 = vadd.f32 %v172_v35, %v44_v29 }
  0xe2   :  { %v212_v37 = vmax.f32 %v178_v34, 0.0 }
  0xe3   :  { %v211_v38 = vmax.f32 %v173_v36, 0.0  ;;  %v501_v39 = vpop.f32.mrb[2].mxu0 }
  0xe4   :  { %v188_v40 = vadd.f32 %v501_v39, %v59_v32  ;;  %v182_v41 = vpop.f32.mrb[3].mxu0 }
  0xe5   :  { %v183_v43 = vadd.f32 %v182_v41, %v54_v30  ;;  %v549_v44 = vpack.c.bf16 %v212_v37, %v211_v38 }
  0xe6   :  { %v214_v46 = vmax.f32 %v188_v40, 0.0 }
  0xe7   :  { %v213_v47 = vmax.f32 %v183_v43, 0.0  ;;  %v504_v48 = vpop.f32.mrb[4].mxu0  ;;  %550 = vmatprep.subr.bf16.mxu1 %v549_v44 }
  0xe8   :  { %v198_v49 = vadd.f32 %v504_v48, %v69_v42  ;;  %v192_v50 = vpop.f32.mrb[5].mxu0  ;;  %552 = vmatpush3.bf16.msra.mxu1 %v549_v44 }
  0xe9   :  { %v553_v51 = vpack.c.bf16 %v214_v46, %v213_v47  ;;  %v193_v52 = vadd.f32 %v192_v50, %v64_v45 }
  0xea   :  { %v216_v53 = vmax.f32 %v198_v49, 0.0 }
  0xeb   :  { %v215_v55 = vmax.f32 %v193_v52, 0.0  ;;  %v507_v56 = vpop.f32.mrb[6].mxu0  ;;  %554 = vmatprep.subr.bf16.mxu1 %v553_v51 }
  0xec   :  { %v208_v58 = vadd.f32 %v507_v56, %v79_v54  ;;  %v202_v59 = vpop.f32.mrb[7].mxu0  ;;  %556 = vmatpush3.bf16.msra.mxu1 %v553_v51 }
  0xed   :  { %v557_v60 = vpack.c.bf16 %v216_v53, %v215_v55  ;;  %v203_v61 = vadd.f32 %v202_v59, %v74_v57 }
  0xee   :  { %v218_v62 = vmax.f32 %v208_v58, 0.0 }
  0xef   :  { %v217_v63 = vmax.f32 %v203_v61, 0.0  ;;  %558 = vmatprep.subr.bf16.mxu1 %v557_v60 }
  0xf0   :  { %560 = vmatpush3.bf16.msra.mxu1 %v557_v60 }
  0xf1   :  { %v561_v0 = vpack.c.bf16 %v218_v62, %v217_v63 }
  0xf3   :  { %562 = vmatprep.subr.bf16.mxu1 %v561_v0 }
  0xf4   :  { %564 = vmatpush3.bf16.msra.mxu1 %v561_v0 }
  0xf7   :  { %525 = vmatmul.mubr.msk.f32.vlgmr.msra.gmra.mrb[0].mxu1 %vm247_vm1, %v220_v1 }
  0xf8   :  { %527 = vmatprep.mubr.msk.f32.mxu1 %vm247_vm1, %v221_v2 }
  0xfb   :  { %528 = vmatmul.mubr.msk.f32.gmra.mrb[2].mxu1 %vm247_vm1, %v222_v3 }
 0x1ca   :  { %v526_v8 = vpop.f32.mrb[0].mxu1 }
 0x1cb   :  { %v332_v9 = vadd.f32 %v526_v8, %v235_v6  ;;  %v326_v10 = vpop.f32.mrb[1].mxu1 }
 0x1cc   :  { %v327_v11 = vadd.f32 %v326_v10, %v230_v7 }
 0x1cd   :  { %v346_v12 = vmax.f32 %v332_v9, 0.0 }
 0x1ce   :  { %v345_v14 = vmax.f32 %v327_v11, 0.0  ;;  %v529_v15 = vpop.f32.mrb[2].mxu1 }
 0x1cf   :  { %v342_v17 = vadd.f32 %v529_v15, %v245_v13  ;;  %v336_v18 = vpop.f32.mrb[3].mxu1 }
 0x1d0   :  { %v566_v19 = vpack.c.bf16 %v346_v12, %v345_v14  ;;  %v337_v20 = vadd.f32 %v336_v18, %v240_v16 }
 0x1d1   :  { %v348_v21 = vmax.f32 %v342_v17, 0.0 }
 0x1d2   :  { %v347_v22 = vmax.f32 %v337_v20, 0.0  ;;  %567 = vmatpush3.bf16.msra.mxu0 %v566_v19 }
 0x1d3   :  { %568 = vmatprep.subr.bf16.mxu0 %v605_v4 }
 0x1d4   :  { %v569_v23 = vpack.c.bf16 %v348_v21, %v347_v22 }
 0x1d6   :  { %570 = vmatpush3.bf16.msra.mxu0 %v569_v23 }
 0x1d9   :  { %539 = vmatmul.mubr.msk.f32.vlgmr.msra.gmra.mrb[8].mxu0 %vm81_vm0, %v349_v24 }
 0x2ac   :  { %v425_v26 = vpop.f32.mrb[8].mxu0 }
 0x2ad   :  { %v426_v27 = vadd.f32 %v425_v26, %v354_v25  ;;  %v540_v28 = vpop.f32.mrb[9].mxu0 }
 0x2af   :  { %578 = vtanh.f32 %v426_v27 }
 0x2b9   :  { %v579_v29 = vpop.eup %578 }
 0x2ba   :  { %v430_v30 = vmul.f32 2.0, %v579_v29 }
 0x2bc   :  { %431 = vst [vmem:[#allocation2] sm:$0xff] %v430_v30 }
 0x2bd   :  { %591 = shalt.err (!%p588_p4)
}
 0x2be   :  { %s592_s27 = scalar_lea.hbm %s759_s5, 128 }
 0x2bf   :  { %p593_p5 = scmp.ne.s32.totalorder %s759_s5, %s592_s27  ;;  %p596_p6 = scmp.lt.u32.totalorder %s592_s27, %s759_s5 }
 0x2c1   :  { %p598_p7 = pnand %p596_p6, %p593_p5 }
 0x2c3   :  { %601 = shalt.err (!%p598_p7)
}
 0x2c4   :  { %441 = dma.vmem_to_hbm [thread:$0]  %s439_s24, 128, %s759_s5, [#allocation3]  }
 0x2c5   :  { %602 = dma.done.wait [#allocation3], 128  }
 0x2c6   :  { %603 = vsyncadd [#allocation3], 4294967168 }
 0x2c7   :  { %445 = vsyncpa [#allocation3], 1 }

</bundles_post_ra>
